<compile_context>
chip_gen: v7x
topology: tpu7x:2x2x1
jax: 0.10.0
libtpu: 0.0.40
codegen_flags: <defaults>
</compile_context>

<pallas_src>
import jax
import jax.numpy as jnp
from jax.experimental import pallas as pl
from jax.experimental.pallas import tpu as pltpu


def _rezero_kernel(alpha_ref, x_ref, o_ref):
    # alpha_ref: (1,) f32 in SMEM; x_ref / o_ref: (tile_rows, lane) in VMEM.
    a = alpha_ref[0]
    o_ref[...] = (x_ref[...] * a).astype(o_ref.dtype)


def _chip_budget():
    """Return (block_bytes, vmem_limit_bytes) from the chip's VMEM capacity."""
    vmem_cap = 128 * 1024 * 1024
    try:
        info = pltpu.get_tpu_info()
        vmem_cap = getattr(info, "vmem_capacity_bytes", vmem_cap)
    except Exception:
        pass
    if vmem_cap <= 64 * 1024 * 1024:
        # v7x: 64 MiB physical VMEM, 3.2 TB/s HBM -> bigger blocks to amortize
        # per-step overhead; 2 bufs x (in+out) x 6 MiB = 24 MiB + headroom.
        return 6 * 1024 * 1024, 40 * 1024 * 1024
    # v5e / v6e: 128 MiB physical VMEM; 4 MiB blocks keep step overhead ~3-5%.
    return 4 * 1024 * 1024, 24 * 1024 * 1024


def rezero(x, alpha, *, min_pallas_bytes=256 * 1024, donate_x=False):
    """y = alpha * x, elementwise; alpha is a scalar parameter of shape (1,)."""
    orig_shape = x.shape
    dtype = x.dtype
    total = x.size
    itemsize = jnp.dtype(dtype).itemsize
    alpha_f32 = jnp.asarray(alpha, dtype=jnp.float32).reshape(())

    aligned = (total // 128) * 128
    # Small-input (or sub-128-element) bypass: launch + DMA setup dominates a
    # standalone pass; XLA fuses the scalar multiply into adjacent ops anyway.
    if aligned == 0 or total * itemsize < min_pallas_bytes:
        return (x * alpha_f32).astype(dtype)

    # Sublane packing granule: 8 rows f32, 16 bf16, 32 int8/fp8.
    granule = max(8, 32 // itemsize)

    # Widest lane-dense last dim (multiple of 128) that divides the aligned count.
    lane = 128
    for cand in (8192, 4096, 2048, 1024, 512, 256, 128):
        if aligned % cand == 0:
            lane = cand
            break
    rows = aligned // lane

    block_bytes, vmem_limit = _chip_budget()
    tile_rows = max(granule,
                    (block_bytes // (lane * itemsize)) // granule * granule)
    if tile_rows >= rows:
        if rows > granule:
            # Keep >= 2 grid blocks so both v7x TensorCores engage on the
            # "parallel" axis; v5e/v6e are single-TC so this costs nothing.
            half = -(-rows // 2)
            tile_rows = min(rows, -(-half // granule) * granule)
        else:
            tile_rows = rows  # full-dim block is always legal
    grid = (pl.cdiv(rows, tile_rows),)

    x_flat = jnp.reshape(x, (-1,))
    x_prefix = x_flat if aligned == total else x_flat[:aligned]
    x2d = jnp.reshape(x_prefix, (rows, lane))

    # Keep alpha in f32 so low-precision inputs don't round the learned scalar.
    alpha_smem = jnp.reshape(alpha_f32, (1,))

    out2d = pl.pallas_call(
        _rezero_kernel,
        out_shape=jax.ShapeDtypeStruct((rows, lane), dtype),
        grid_spec=pltpu.PrefetchScalarGridSpec(
            num_scalar_prefetch=0,
            grid=grid,
            in_specs=[
                pl.BlockSpec(memory_space=pltpu.MemorySpace.SMEM),  # alpha
                # TODO(synk): sweep pipeline_mode=pl.Buffered(3) here on v7x if
                # a profile still shows exposed DMA between steps.
                pl.BlockSpec((tile_rows, lane), lambda i: (i, 0)),  # x tile
            ],
            out_specs=pl.BlockSpec((tile_rows, lane), lambda i: (i, 0)),
        ),
        compiler_params=pltpu.CompilerParams(
            dimension_semantics=("parallel",),
            vmem_limit_bytes=vmem_limit,
        ),
        input_output_aliases=(
            {1: 0} if (donate_x and aligned == total) else {}),
    )(alpha_smem, x2d)

    out_flat = jnp.reshape(out2d, (-1,))
    if aligned != total:
        # <128-element ragged tail: plain multiply (no padded copy, no slice pass).
        tail = (x_flat[aligned:] * alpha_f32).astype(dtype)
        out_flat = jnp.concatenate([out_flat, tail])
    return jnp.reshape(out_flat, orig_shape)


if __name__ == "__main__":
    key = jax.random.PRNGKey(0)
    # NCHW input like the PyTorch module: batch=2, channels=4, spatial=16x16.
    x = jax.random.normal(key, (2, 4, 16, 16), dtype=jnp.float32)

    alpha0 = jnp.zeros((1,), dtype=jnp.float32)   # nn.Parameter(torch.zeros(1))
    alpha = jnp.array([0.5], dtype=jnp.float32)

    # Default path for tiny inputs: small-input bypass (pure XLA multiply).
    y_bypass = jax.block_until_ready(rezero(x, alpha))
    assert jnp.allclose(y_bypass, 0.5 * x, atol=1e-6)

    # Force the Pallas kernel path on the module-sized input.
    y0 = jax.block_until_ready(rezero(x, alpha0, min_pallas_bytes=0))
    y1 = jax.block_until_ready(rezero(x, alpha, min_pallas_bytes=0))
    assert y0.shape == x.shape and y0.dtype == x.dtype
    assert jnp.allclose(y0, jnp.zeros_like(x))
    assert jnp.allclose(y1, 0.5 * x, atol=1e-6)

    # bf16 input: alpha stays f32, result is cast back to bf16.
    xb = x.astype(jnp.bfloat16)
    yb = jax.block_until_ready(rezero(xb, alpha, min_pallas_bytes=0))
    assert yb.dtype == jnp.bfloat16
    assert jnp.allclose(yb.astype(jnp.float32), 0.5 * x, atol=1e-2)

    # Ragged size > 128: Pallas runs on the 128-aligned prefix, jnp handles the tail.
    xr = jax.random.normal(jax.random.PRNGKey(1), (3, 67), dtype=jnp.float32)
    yr = jax.block_until_ready(rezero(xr, alpha, min_pallas_bytes=0))
    assert yr.shape == xr.shape
    assert jnp.allclose(yr, 0.5 * xr, atol=1e-6)

    # Larger input: exercises the >=2-block grid (both TCs on v7x) with defaults.
    xl = jax.random.normal(jax.random.PRNGKey(2), (64, 2048), dtype=jnp.float32)
    yl = jax.block_until_ready(rezero(xl, alpha))
    assert jnp.allclose(yl, 0.5 * xl, atol=1e-6)

    print("KERNEL_OK")
</pallas_src>

<mosaic_0001>
module attributes {stable_mosaic.version = 11 : i64} {
  func.func @_rezero_kernel(%arg0: i32, %arg1: memref<1xf32, #tpu.memory_space<smem>>, %arg2: memref<1x2048xf32, #tpu.memory_space<vmem>>, %arg3: memref<1x2048xf32, #tpu.memory_space<vmem>>) attributes {dimension_semantics = [#tpu.dimension_semantics<parallel>], iteration_bounds = array<i64: 1>, scalar_prefetch = 0 : i64, scratch_operands = 0 : i64, tpu.core_type = #tpu.core_type<tc>, window_params = [{transform_indices = @transform_0, window_bounds = array<i64: 1>}, {transform_indices = @transform_1, window_bounds = array<i64: 1, 2048>}, {transform_indices = @transform_2, window_bounds = array<i64: 1, 2048>}]} {
    %c0 = arith.constant 0 : index
    %0 = memref.load %arg1[%c0] : memref<1xf32, #tpu.memory_space<smem>>
    %c0_0 = arith.constant 0 : index
    %c0_1 = arith.constant 0 : index
    %1 = vector.load %arg2[%c0_0, %c0_1] : memref<1x2048xf32, #tpu.memory_space<vmem>>, vector<1x2048xf32>
    %2 = vector.broadcast %0 : f32 to vector<1x2048xf32>
    %3 = arith.mulf %1, %2 : vector<1x2048xf32>
    %c0_2 = arith.constant 0 : index
    %c0_3 = arith.constant 0 : index
    %4 = vector.load %arg3[%c0_2, %c0_3] : memref<1x2048xf32, #tpu.memory_space<vmem>>, vector<1x2048xf32>
    tpu.vector_store %arg3[%c0_2, %c0_3], %3 {strides = array<i32>} : memref<1x2048xf32, #tpu.memory_space<vmem>>, vector<1x2048xf32>,
    return
  }
  func.func @transform_0(%arg0: i32) -> i32 {
    %c0_i32 = arith.constant 0 : i32
    %c0_i32_0 = arith.constant 0 : i32
    return %c0_i32 : i32
  }
  func.func @transform_1(%arg0: i32) -> (i32, i32) {
    %c0_i32 = arith.constant 0 : i32
    %c0_i32_0 = arith.constant 0 : i32
    return %arg0, %c0_i32 : i32, i32
  }
  func.func @transform_2(%arg0: i32) -> (i32, i32) {
    %c0_i32 = arith.constant 0 : i32
    %c0_i32_0 = arith.constant 0 : i32
    return %arg0, %c0_i32 : i32, i32
  }
}

</mosaic_0001>

<bundles_post_ra>
// kernel: tpu_custom_call.1
= control target key start
LH: loop header
LB: loop body
LE: loop exit
PB: predicated region body
PF: predicated region fallthrough
CT: control target
= control target key end

     0   :  { %8 = vsyncpa [#allocation4], 0  ;;  %s142_s0 = inlined_call_operand.<no memory space> [shape: f32[1], index: 0, kind: input, shape index: {}]   ;;  %s143_s1 = inlined_call_operand.hbm [shape: f32[1,2048], index: 1, kind: input, shape index: {}]   ;;  %s144_s2 = inlined_call_operand.hbm [shape: f32[1,2048], index: 2, kind: output, shape index: {}]  }
   0x1   :  { %9 = vsyncpa [#allocation5], 0  ;;  %s98_s9 = smov [#allocation3]   ;;  %s50_s13 = scalar_lea.hbm %s143_s1, 256 }
   0x2   :  { %s18_s10 = sshll.u32 %s98_s9, 4  ;;  %p51_p0 = scmp.ne.s32.totalorder %s143_s1, %s50_s13  ;;  %s19_s10 = int_to_ptr.vmem [resolvable:$true] %s18_s10 }
   0x3   :  { %p54_p1 = scmp.lt.u32.totalorder %s50_s13, %s143_s1 }
   0x5   :  { %p56_p2 = pnand %p54_p1, %p51_p0 }
   0x7   :  { %59 = shalt.err (!%p56_p2)
}
   0x8   :  { %s60_s18 = scalar_lea.vmem %s19_s10, 256  ;;  %p65_p4 = scmp.lt.s32.totalorder %s19_s10, %s19_s10 }
   0x9   :  { %p61_p3 = scmp.ne.s32.totalorder %s19_s10, %s60_s18  ;;  %p66_p5 = scmp.lt.s32.totalorder %s60_s18, %s60_s18 }
   0xb   :  { %p67_p6 = por %p66_p5, %p65_p4 }
   0xd   :  { %p68_p7 = pnand %p67_p6, %p61_p3 }
   0xf   :  { %71 = shalt.err (!%p68_p7)
}
  0x10   :  { %21 = dma.hbm_to_vmem [thread:$0]  %s143_s1, 256, %s19_s10, [#allocation4]  }
  0x11   :  { %94 = dma.done.wait [#allocation4], 256  }
  0x12   :  { %95 = vsyncadd [#allocation4], 4294967040  ;;  %v28_v0 = vstv %s142_s0  ;;  %s99_s23 = smov [#allocation6]   ;;  %v26_v1 = vld [vmem:[#allocation3] sm:$0xff]  ;;  %v27_v2 = vld [vmem:[#allocation3 + $0x8] sm:$0xff] }
  0x13   :  { %s39_s24 = sshll.u32 %s99_s23, 4  ;;  %v29_v3 = vmul.f32 %v28_v0, %v26_v1  ;;  %v30_v4 = vmul.f32 %v28_v0, %v27_v2  ;;  %s40_s24 = int_to_ptr.vmem [resolvable:$true] %s39_s24 }
  0x14   :  { %s72_s25 = scalar_lea.vmem %s40_s24, 256  ;;  %p77_p9 = scmp.lt.s32.totalorder %s40_s24, %s40_s24 }
  0x15   :  { %31 = vst [vmem:[#allocation6] sm:$0xff] %v29_v3  ;;  %32 = vst [vmem:[#allocation6 + $0x8] sm:$0xff] %v30_v4  ;;  %p73_p8 = scmp.ne.s32.totalorder %s40_s24, %s72_s25  ;;  %p78_p10 = scmp.lt.s32.totalorder %s72_s25, %s72_s25 }
  0x17   :  { %p79_p11 = por %p78_p10, %p77_p9 }
  0x19   :  { %p80_p12 = pnand %p79_p11, %p73_p8 }
  0x1b   :  { %83 = shalt.err (!%p80_p12)
}
  0x1c   :  { %s84_s0 = scalar_lea.hbm %s144_s2, 256 }
  0x1d   :  { %p85_p13 = scmp.ne.s32.totalorder %s144_s2, %s84_s0  ;;  %p88_p0 = scmp.lt.u32.totalorder %s84_s0, %s144_s2 }
  0x1f   :  { %p90_p1 = pnand %p88_p0, %p85_p13 }
  0x21   :  { %93 = shalt.err (!%p90_p1)
}
  0x22   :  { %42 = dma.vmem_to_hbm [thread:$0]  %s40_s24, 256, %s144_s2, [#allocation5]  }
  0x23   :  { %96 = dma.done.wait [#allocation5], 256  }
  0x24   :  { %97 = vsyncadd [#allocation5], 4294967040 }
  0x25   :  { %46 = vsyncpa [#allocation4], 1 }
  0x26   :  { %47 = vsyncpa [#allocation5], 1 }

</bundles_post_ra>
